<compile_context>
chip_gen: v7x
topology: tpu7x:2x2x1
jax: 0.10.0
libtpu: 0.0.40
codegen_flags: <defaults>
</compile_context>

<pallas_src>
import functools

import jax
import jax.numpy as jnp
from jax.experimental import pallas as pl
from jax.experimental.pallas import tpu as pltpu


def _round_up(x: int, m: int) -> int:
    return ((x + m - 1) // m) * m


def mlp_kernel(x_ref, w1_ref, b1_ref, w2_ref, b2_ref, o_ref):
    # Layer 1 on the MXU: (TILE_N, in) @ (in, H) -> fp32 accumulate.
    h = jnp.dot(x_ref[...], w1_ref[...], preferred_element_type=jnp.float32)
    # Epilogue in fp32 on the VPU (bias broadcast over the sublane/batch axis).
    h = jnp.maximum(h + b1_ref[...], 0.0)
    # Layer 2 on the MXU: cast h back to the matmul dtype (bf16 fast path when
    # enabled), fp32 accumulate. Output slab is lane-dense (padded to 128).
    y = jnp.dot(h.astype(w2_ref.dtype), w2_ref[...],
                preferred_element_type=jnp.float32)
    y = y + b2_ref[...]
    o_ref[...] = y.astype(o_ref.dtype)


@functools.partial(jax.jit, static_argnames=("tile_n", "matmul_dtype"))
def neuralnet_forward(x, w1, b1, w2, b2, *, tile_n=512,
                      matmul_dtype=jnp.float32):
    """Fused two-layer MLP forward (matches NeuralNet.forward).

    x : (N, in_size) float32
    w1: (in_size, hidden), b1: (1, hidden)
    w2: (hidden, out_size), b2: (1, out_size)
    returns (N, out_size) float32
    """
    N, in_size = x.shape
    hidden = w1.shape[1]
    out_size = w2.shape[1]

    # --- Lane-dense output: pad the last dim of layer 2 to a multiple of 128.
    out_p = _round_up(out_size, 128)
    if out_p != out_size:
        w2 = jnp.pad(w2, ((0, 0), (0, out_p - out_size)))
        b2 = jnp.pad(b2, ((0, 0), (0, out_p - out_size)))

    # --- Batch tiling: multiple of 8 sublanes, no bigger than (padded) N.
    tile = max(8, min(int(tile_n), _round_up(N, 8)))
    tile = _round_up(tile, 8)
    n_pad = _round_up(N, tile)
    if n_pad != N:
        x = jnp.pad(x, ((0, n_pad - N), (0, 0)))

    # --- Matmul operand dtype (bf16 fast path optional); fp32 epilogue params.
    x_m = x.astype(matmul_dtype)
    w1_m = w1.astype(matmul_dtype)
    w2_m = w2.astype(matmul_dtype)
    b1_f = b1.astype(jnp.float32)
    b2_f = b2.astype(jnp.float32)

    grid = (n_pad // tile,)
    itemsize = jnp.dtype(matmul_dtype).itemsize
    flops = 2 * n_pad * (in_size * hidden + hidden * out_p)
    bytes_accessed = (
        n_pad * in_size * itemsize            # x in
        + in_size * hidden * itemsize         # w1
        + hidden * out_p * itemsize           # w2
        + (hidden + out_p) * 4                # biases
        + n_pad * out_p * 4                   # y out
    )

    out = pl.pallas_call(
        mlp_kernel,
        out_shape=jax.ShapeDtypeStruct((n_pad, out_p), jnp.float32),
        grid=grid,
        in_specs=[
            pl.BlockSpec((tile, in_size), lambda i: (i, 0)),   # x tile
            pl.BlockSpec((in_size, hidden), lambda i: (0, 0)),  # w1 resident
            pl.BlockSpec((1, hidden), lambda i: (0, 0)),        # b1 resident
            pl.BlockSpec((hidden, out_p), lambda i: (0, 0)),    # w2 resident
            pl.BlockSpec((1, out_p), lambda i: (0, 0)),         # b2 resident
        ],
        out_specs=pl.BlockSpec((tile, out_p), lambda i: (i, 0)),
        compiler_params=pltpu.CompilerParams(
            dimension_semantics=("parallel",)),  # megacore sharding on v7x
        cost_estimate=pl.CostEstimate(
            flops=flops, transcendentals=0, bytes_accessed=bytes_accessed),
    )(x_m, w1_m, b1_f, w2_m, b2_f)

    return out[:N, :out_size]


def init_params(key, in_size, hidden, out_size):
    """Deterministic init mimicking nn.Linear's uniform(-1/sqrt(fan_in), ...)."""
    k1, k2, k3, k4 = jax.random.split(key, 4)
    bound1 = 1.0 / jnp.sqrt(in_size)
    bound2 = 1.0 / jnp.sqrt(hidden)
    w1 = jax.random.uniform(k1, (in_size, hidden), jnp.float32, -bound1, bound1)
    b1 = jax.random.uniform(k2, (1, hidden), jnp.float32, -bound1, bound1)
    w2 = jax.random.uniform(k3, (hidden, out_size), jnp.float32, -bound2, bound2)
    b2 = jax.random.uniform(k4, (1, out_size), jnp.float32, -bound2, bound2)
    return w1, b1, w2, b2


def _ref(x, w1, b1, w2, b2):
    return jnp.maximum(x @ w1 + b1, 0.0) @ w2 + b2


if __name__ == "__main__":
    in_size, hidden, out_size = 32, 64, 4
    key = jax.random.PRNGKey(0)
    kx, kp, kx2 = jax.random.split(key, 3)
    w1, b1, w2, b2 = init_params(kp, in_size, hidden, out_size)

    # --- Small case (N=8), fp32 path: must match the PyTorch-style reference.
    x_small = jax.random.normal(kx, (8, in_size), jnp.float32)
    y = jax.block_until_ready(neuralnet_forward(x_small, w1, b1, w2, b2))
    y_ref = _ref(x_small, w1, b1, w2, b2)
    assert y.shape == (8, out_size)
    assert jnp.allclose(y, y_ref, atol=1e-5, rtol=1e-5)

    # --- Ragged batch (N=300, tile=128 -> 3 grid steps incl. padded tail).
    x_big = jax.random.normal(kx2, (300, in_size), jnp.float32)
    y2 = jax.block_until_ready(
        neuralnet_forward(x_big, w1, b1, w2, b2, tile_n=128))
    y2_ref = _ref(x_big, w1, b1, w2, b2)
    assert y2.shape == (300, out_size)
    assert jnp.allclose(y2, y2_ref, atol=1e-5, rtol=1e-5)

    # --- bf16 matmul / fp32 accumulate fast path (looser tolerance vs fp32 ref).
    y3 = jax.block_until_ready(
        neuralnet_forward(x_big, w1, b1, w2, b2, tile_n=128,
                          matmul_dtype=jnp.bfloat16))
    assert y3.shape == (300, out_size)
    assert jnp.allclose(y3, y2_ref, atol=5e-2, rtol=5e-2)

    print("KERNEL_OK")
</pallas_src>

<mosaic_0001>
module attributes {stable_mosaic.version = 11 : i64} {
  func.func @mlp_kernel(%arg0: i32, %arg1: memref<8x32xf32, #tpu.memory_space<vmem>>, %arg2: memref<32x64xf32, #tpu.memory_space<vmem>>, %arg3: memref<1x64xf32, #tpu.memory_space<vmem>>, %arg4: memref<64x128xf32, #tpu.memory_space<vmem>>, %arg5: memref<1x128xf32, #tpu.memory_space<vmem>>, %arg6: memref<8x128xf32, #tpu.memory_space<vmem>>) attributes {dimension_semantics = [#tpu.dimension_semantics<parallel>], iteration_bounds = array<i64: 1>, scalar_prefetch = 0 : i64, scratch_operands = 0 : i64, tpu.core_type = #tpu.core_type<tc>, window_params = [{transform_indices = @transform_0, window_bounds = array<i64: 8, 32>}, {pipeline_mode = #tpu.pipeline_mode<synchronous>, transform_indices = @transform_1, window_bounds = array<i64: 32, 64>}, {pipeline_mode = #tpu.pipeline_mode<synchronous>, transform_indices = @transform_2, window_bounds = array<i64: 1, 64>}, {pipeline_mode = #tpu.pipeline_mode<synchronous>, transform_indices = @transform_3, window_bounds = array<i64: 64, 128>}, {pipeline_mode = #tpu.pipeline_mode<synchronous>, transform_indices = @transform_4, window_bounds = array<i64: 1, 128>}, {transform_indices = @transform_5, window_bounds = array<i64: 8, 128>}]} {
    %c0 = arith.constant 0 : index
    %c0_0 = arith.constant 0 : index
    %0 = vector.load %arg1[%c0, %c0_0] : memref<8x32xf32, #tpu.memory_space<vmem>>, vector<8x32xf32>
    %c0_1 = arith.constant 0 : index
    %c0_2 = arith.constant 0 : index
    %1 = vector.load %arg2[%c0_1, %c0_2] : memref<32x64xf32, #tpu.memory_space<vmem>>, vector<32x64xf32>
    %cst = arith.constant dense<0.000000e+00> : vector<8x64xf32>
    %2 = tpu.matmul %0, %1, %cst {dimension_numbers = #tpu.dot_dimension_numbers<[1], [0], [0], [1], [0, 0, 1, 1], [], []>} : vector<8x32xf32>, vector<32x64xf32>, vector<8x64xf32> -> vector<8x64xf32>
    %c0_3 = arith.constant 0 : index
    %c0_4 = arith.constant 0 : index
    %3 = vector.load %arg3[%c0_3, %c0_4] : memref<1x64xf32, #tpu.memory_space<vmem>>, vector<1x64xf32>
    %4 = vector.broadcast %3 : vector<1x64xf32> to vector<8x64xf32>
    %5 = arith.addf %2, %4 : vector<8x64xf32>
    %cst_5 = arith.constant 0.000000e+00 : f32
    %6 = vector.broadcast %cst_5 : f32 to vector<8x64xf32>
    %7 = arith.maximumf %5, %6 : vector<8x64xf32>
    %c0_6 = arith.constant 0 : index
    %c0_7 = arith.constant 0 : index
    %8 = vector.load %arg4[%c0_6, %c0_7] : memref<64x128xf32, #tpu.memory_space<vmem>>, vector<64x128xf32>
    %cst_8 = arith.constant dense<0.000000e+00> : vector<8x128xf32>
    %9 = tpu.matmul %7, %8, %cst_8 {dimension_numbers = #tpu.dot_dimension_numbers<[1], [0], [0], [1], [0, 0, 1, 1], [], []>} : vector<8x64xf32>, vector<64x128xf32>, vector<8x128xf32> -> vector<8x128xf32>
    %c0_9 = arith.constant 0 : index
    %c0_10 = arith.constant 0 : index
    %10 = vector.load %arg5[%c0_9, %c0_10] : memref<1x128xf32, #tpu.memory_space<vmem>>, vector<1x128xf32>
    %11 = vector.broadcast %10 : vector<1x128xf32> to vector<8x128xf32>
    %12 = arith.addf %9, %11 : vector<8x128xf32>
    %c0_11 = arith.constant 0 : index
    %c0_12 = arith.constant 0 : index
    %13 = vector.load %arg6[%c0_11, %c0_12] : memref<8x128xf32, #tpu.memory_space<vmem>>, vector<8x128xf32>
    tpu.vector_store %arg6[%c0_11, %c0_12], %12 {strides = array<i32>} : memref<8x128xf32, #tpu.memory_space<vmem>>, vector<8x128xf32>,
    return
  }
  func.func @transform_0(%arg0: i32) -> (i32, i32) {
    %c0_i32 = arith.constant 0 : i32
    %c0_i32_0 = arith.constant 0 : i32
    return %arg0, %c0_i32 : i32, i32
  }
  func.func @transform_1(%arg0: i32) -> (i32, i32) {
    %c0_i32 = arith.constant 0 : i32
    %c0_i32_0 = arith.constant 0 : i32
    %c0_i32_1 = arith.constant 0 : i32
    return %c0_i32, %c0_i32_0 : i32, i32
  }
  func.func @transform_2(%arg0: i32) -> (i32, i32) {
    %c0_i32 = arith.constant 0 : i32
    %c0_i32_0 = arith.constant 0 : i32
    %c0_i32_1 = arith.constant 0 : i32
    return %c0_i32, %c0_i32_0 : i32, i32
  }
  func.func @transform_3(%arg0: i32) -> (i32, i32) {
    %c0_i32 = arith.constant 0 : i32
    %c0_i32_0 = arith.constant 0 : i32
    %c0_i32_1 = arith.constant 0 : i32
    return %c0_i32, %c0_i32_0 : i32, i32
  }
  func.func @transform_4(%arg0: i32) -> (i32, i32) {
    %c0_i32 = arith.constant 0 : i32
    %c0_i32_0 = arith.constant 0 : i32
    %c0_i32_1 = arith.constant 0 : i32
    return %c0_i32, %c0_i32_0 : i32, i32
  }
  func.func @transform_5(%arg0: i32) -> (i32, i32) {
    %c0_i32 = arith.constant 0 : i32
    %c0_i32_0 = arith.constant 0 : i32
    return %arg0, %c0_i32 : i32, i32
  }
}

</mosaic_0001>

<bundles_post_ra>
// kernel: neuralnet_forward.1
= control target key start
LH: loop header
LB: loop body
LE: loop exit
PB: predicated region body
PF: predicated region fallthrough
CT: control target
= control target key end

     0   :  { %v270_v0 = vmov 0.0|0.0   ;;  %vm271_vm0 = vmmov 0   ;;  %v272_v4 = vmov 0.0   ;;  %vm32_vm1 = vcmask 261120   ;;  %s351_s1 = inlined_call_operand.vmem [shape: f32[32,64], index: 1, kind: input, shape index: {}]   ;;  %s352_s3 = inlined_call_operand.vmem [shape: f32[64,128], index: 3, kind: input, shape index: {}]   ;;  %s353_s0 = inlined_call_operand.vmem [shape: f32[8,32], index: 0, kind: input, shape index: {}]   ;;  %s354_s2 = inlined_call_operand.vmem [shape: f32[1,64], index: 2, kind: input, shape index: {}]   ;;  %s355_s4 = inlined_call_operand.vmem [shape: f32[1,128], index: 4, kind: input, shape index: {}]   ;;  %s356_s5 = inlined_call_operand.vmem [shape: f32[8,128], index: 5, kind: output, shape index: {}]  }
   0x1   :  { %249 = vmatprep.subr.bf16.mxu0 %v270_v0  ;;  %v21_v1 = vld [vmem:[%s351_s1] sm:$0xff]  ;;  %v22_v2 = vld [vmem:[%s351_s1 + $0x8] sm:$0xff]  ;;  %v23_v3 = vld [vmem:[%s351_s1 + $0x10] sm:$0xff]  ;;  %227 = vmatprep.mubr.msk.f32.mxu0 %vm271_vm0, %v272_v4  ;;  %vm122_vm2 = vcmask 523264  }
   0x2   :  { %v250_v5 = vpack.c.bf16 %v22_v2, %v21_v1  ;;  %v24_v6 = vld [vmem:[%s351_s1 + $0x18] sm:$0xff]  ;;  %255 = vmatprep.subr.bf16.mxu1 %v270_v0  ;;  %v107_v7 = vld [vmem:[%s352_s3] sm:$0xff]  ;;  %246 = vmatprep.mubr.msk.f32.mxu1 %vm271_vm0, %v272_v4  ;;  %v108_v8 = vld [vmem:[%s352_s3 + $0x8] sm:$0xff] }
   0x3   :  { %v109_v9 = vld [vmem:[%s352_s3 + $0x10] sm:$0xff]  ;;  %v110_v10 = vld [vmem:[%s352_s3 + $0x18] sm:$0xff]  ;;  %v253_v11 = vpack.c.bf16 %v24_v6, %v23_v3  ;;  %v256_v12 = vpack.c.bf16 %v108_v8, %v107_v7  ;;  %v111_v14 = vld [vmem:[%s352_s3 + $0x20] sm:$0xff] }
   0x4   :  { %251 = vmatpush3.bf16.msra.mxu0 %v250_v5  ;;  %v259_v13 = vpack.c.bf16 %v110_v10, %v109_v9  ;;  %v112_v15 = vld [vmem:[%s352_s3 + $0x28] sm:$0xff]  ;;  %v20_v16 = vld [vmem:[%s353_s0] sm:$0xff]  ;;  %v113_v18 = vld [vmem:[%s352_s3 + $0x30] sm:$0xff] }
   0x5   :  { %252 = vmatprep.subr.bf16.mxu0 %v270_v0  ;;  %257 = vmatpush3.bf16.msra.mxu1 %v256_v12  ;;  %v262_v17 = vpack.c.bf16 %v112_v15, %v111_v14  ;;  %v114_v19 = vld [vmem:[%s352_s3 + $0x38] sm:$0xff]  ;;  %v201_v21 = vld [vmem:[%s354_s2] ss:$0 sm:$0xff] }
   0x6   :  { %258 = vmatprep.subr.bf16.mxu1 %v270_v0  ;;  %v265_v20 = vpack.c.bf16 %v114_v19, %v113_v18  ;;  %v203_v26 = vld [vmem:[%s355_s4] ss:$0 sm:$0xff] }
   0x8   :  { %254 = vmatpush3.bf16.msra.mxu0 %v253_v11 }
   0x9   :  { %260 = vmatpush3.bf16.msra.mxu1 %v259_v13 }
   0xa   :  { %261 = vmatprep.subr.bf16.mxu1 %v270_v0 }
   0xb   :  { %228 = vmatmul.mubr.msk.f32.vlgmr.msra.gmra.mrb[0].mxu0 %vm32_vm1, %v20_v16 }
   0xd   :  { %263 = vmatpush3.bf16.msra.mxu1 %v262_v17 }
   0xe   :  { %264 = vmatprep.subr.bf16.mxu1 %v270_v0 }
  0x11   :  { %266 = vmatpush3.bf16.msra.mxu1 %v265_v20 }
  0xde   :  { %v102_v22 = vpop.f32.mrb[0].mxu0 }
  0xdf   :  { %v103_v23 = vadd.f32 %v201_v21, %v102_v22  ;;  %v229_v24 = vpop.f32.mrb[1].mxu0 }
  0xe1   :  { %v106_v25 = vmax.f32 %v103_v23, 0.0 }
  0xe3   :  { %247 = vmatmul.mubr.msk.f32.vlgmr.msra.gmra.mrb[0].mxu1 %vm122_vm2, %v106_v25 }
 0x1b6   :  { %v192_v27 = vpop.f32.mrb[0].mxu1 }
 0x1b7   :  { %v193_v28 = vadd.f32 %v203_v26, %v192_v27  ;;  %v248_v29 = vpop.f32.mrb[1].mxu1 }
 0x1b9   :  { %196 = vst [vmem:[%s356_s5] sm:$0xff] %v193_v28 }

</bundles_post_ra>
